<compile_context>
chip_gen: v7x
topology: tpu7x:2x2x1
jax: 0.10.0
libtpu: 0.0.40
codegen_flags: <defaults>
</compile_context>

<pallas_src>
import functools
import math

import jax
import jax.numpy as jnp
from jax.experimental import pallas as pl
from jax.experimental.pallas import tpu as pltpu


def _round_up(n, m):
    return -(-n // m) * m


def domain_classifier_kernel(x_ref, w1_ref, b1_ref, w2_ref, b2_ref, out_ref):
    """One batch tile: fc1 (bf16 MXU, f32 acc) -> relu -> fc2 -> stable softmax(dim=1).

    GradReverse.forward is the identity (it only negates gradients in backward),
    so the forward pass ignores `constant`.
    """
    # fc1: bf16 x bf16 on the MXU, f32 accumulation.
    x = x_ref[...].astype(jnp.bfloat16)
    h = jnp.dot(x, w1_ref[...], preferred_element_type=jnp.float32) + b1_ref[...]
    h = jnp.maximum(h, 0.0)

    # fc2 (tiny: H_pad x C), f32.
    logits = jnp.dot(h, w2_ref[...], preferred_element_type=jnp.float32) + b2_ref[...]

    # Numerically stable softmax along dim=1 (class axis).
    m = jnp.max(logits, axis=1, keepdims=True)
    e = jnp.exp(logits - m)
    denom = jnp.sum(e, axis=1, keepdims=True)
    out_ref[...] = (e * pl.reciprocal(denom, approx=True)).astype(out_ref.dtype)


@functools.partial(jax.jit, static_argnames=())
def domain_classifier_forward(x, constant, w1, b1, w2, b2):
    """x: (B, F_logical) f32. w1: (F_pad, H_pad) bf16 (zero-padded). Returns (B, C) f32.

    `constant` only matters for the (not implemented here) backward pass.
    """
    del constant  # TODO(synk): grad-reversal affects backward only; forward is identity.
    B, F = x.shape
    F_pad, H_pad = w1.shape
    C = w2.shape[1]

    # Zero-pad contraction dim to F_pad (exact: padded w1 rows are zero too).
    if F_pad != F:
        x = jnp.pad(x, ((0, 0), (0, F_pad - F)))

    # Batch tiling: TB rows per grid step, weights stay VMEM-resident across steps.
    TB = min(256, _round_up(B, 8))
    B_pad = _round_up(B, TB)
    if B_pad != B:
        x = jnp.pad(x, ((0, B_pad - B), (0, 0)))

    out = pl.pallas_call(
        domain_classifier_kernel,
        out_shape=jax.ShapeDtypeStruct((B_pad, C), jnp.float32),
        grid=(B_pad // TB,),
        in_specs=[
            pl.BlockSpec((TB, F_pad), lambda i: (i, 0)),   # x tile per batch block
            pl.BlockSpec((F_pad, H_pad), lambda i: (0, 0)),  # w1 resident
            pl.BlockSpec((1, H_pad), lambda i: (0, 0)),      # b1 resident
            pl.BlockSpec((H_pad, C), lambda i: (0, 0)),      # w2 resident
            pl.BlockSpec((1, C), lambda i: (0, 0)),          # b2 resident
        ],
        out_specs=pl.BlockSpec((TB, C), lambda i: (i, 0)),
        compiler_params=pltpu.CompilerParams(
            dimension_semantics=("parallel",),
        ),
    )(x, w1, b1, w2, b2)

    return out[:B]


def init_params(key, in_feature, intermediate_nodes, domain_class):
    """nn.Linear-like init (U(-1/sqrt(fan_in), +1/sqrt(fan_in))).

    Returns:
      (w1, b1, w2, b2)             : padded kernel params (w1 bf16, rest f32)
      (w1f, b1f, w2f, b2f)         : unpadded f32 logical params (for reference check)
    """
    k1, k2, k3, k4 = jax.random.split(key, 4)
    bound1 = 1.0 / math.sqrt(in_feature)
    bound2 = 1.0 / math.sqrt(intermediate_nodes)

    # Logical (unpadded, f32), stored transposed as (in, out).
    w1f = jax.random.uniform(k1, (in_feature, intermediate_nodes), jnp.float32,
                             minval=-bound1, maxval=bound1)
    b1f = jax.random.uniform(k2, (1, intermediate_nodes), jnp.float32,
                             minval=-bound1, maxval=bound1)
    w2f = jax.random.uniform(k3, (intermediate_nodes, domain_class), jnp.float32,
                             minval=-bound2, maxval=bound2)
    b2f = jax.random.uniform(k4, (1, domain_class), jnp.float32,
                             minval=-bound2, maxval=bound2)

    # Padded kernel params: F -> multiple of 128, H -> multiple of 128; zero padding
    # (padded b1 entries and padded w2 rows MUST be zero for exactness).
    F_pad = _round_up(in_feature, 128)
    H_pad = _round_up(intermediate_nodes, 128)
    w1 = jnp.zeros((F_pad, H_pad), jnp.float32).at[:in_feature, :intermediate_nodes].set(w1f)
    b1 = jnp.zeros((1, H_pad), jnp.float32).at[:, :intermediate_nodes].set(b1f)
    w2 = jnp.zeros((H_pad, domain_class), jnp.float32).at[:intermediate_nodes, :].set(w2f)
    b2 = b2f

    w1 = w1.astype(jnp.bfloat16)  # halve the dominant HBM->VMEM DMA; f32 acc in-kernel.
    return (w1, b1, w2, b2), (w1f, b1f, w2f, b2f)


if __name__ == "__main__":
    # Module defaults: in_feature = 64 * 3 * 15 = 2880, intermediate_nodes = 100.
    # domain_class is a required ctor arg; pick 3 domains. Small batch.
    batch = 4
    in_feature = 64 * 3 * 15      # 2880
    intermediate_nodes = 100
    domain_class = 3
    constant = 1.0                # GRL lambda; unused in forward

    key = jax.random.PRNGKey(0)
    kx, kp = jax.random.split(key)
    x = jax.random.normal(kx, (batch, in_feature), jnp.float32)
    (w1, b1, w2, b2), (w1f, b1f, w2f, b2f) = init_params(
        kp, in_feature, intermediate_nodes, domain_class)

    out = domain_classifier_forward(x, constant, w1, b1, w2, b2)
    out = jax.block_until_ready(out)
    assert out.shape == (batch, domain_class)

    # sanity: softmax rows sum to 1 (approx reciprocal -> loosened tolerance)
    row_sums = jnp.sum(out, axis=1)
    assert bool(jnp.all(jnp.abs(row_sums - 1.0) < 5e-3)), row_sums

    # cross-check against plain-JAX f32 reference (bf16 weights -> loosened tolerance)
    ref_h = jnp.maximum(x @ w1f + b1f, 0.0)
    ref = jax.nn.softmax(ref_h @ w2f + b2f, axis=1)
    assert bool(jnp.all(jnp.abs(out - ref) < 2e-2)), jnp.max(jnp.abs(out - ref))

    print("KERNEL_OK")
</pallas_src>

<mosaic_0001>
module attributes {stable_mosaic.version = 11 : i64} {
  func.func @domain_classifier_kernel(%arg0: i32, %arg1: memref<8x2944xf32, #tpu.memory_space<vmem>>, %arg2: memref<2944x128xbf16, #tpu.memory_space<vmem>>, %arg3: memref<1x128xf32, #tpu.memory_space<vmem>>, %arg4: memref<128x3xf32, #tpu.memory_space<vmem>>, %arg5: memref<1x3xf32, #tpu.memory_space<vmem>>, %arg6: memref<8x3xf32, #tpu.memory_space<vmem>>) attributes {dimension_semantics = [#tpu.dimension_semantics<parallel>], iteration_bounds = array<i64: 1>, scalar_prefetch = 0 : i64, scratch_operands = 0 : i64, tpu.core_type = #tpu.core_type<tc>, window_params = [{transform_indices = @transform_0, window_bounds = array<i64: 8, 2944>}, {pipeline_mode = #tpu.pipeline_mode<synchronous>, transform_indices = @transform_1, window_bounds = array<i64: 2944, 128>}, {pipeline_mode = #tpu.pipeline_mode<synchronous>, transform_indices = @transform_2, window_bounds = array<i64: 1, 128>}, {pipeline_mode = #tpu.pipeline_mode<synchronous>, transform_indices = @transform_3, window_bounds = array<i64: 128, 3>}, {pipeline_mode = #tpu.pipeline_mode<synchronous>, transform_indices = @transform_4, window_bounds = array<i64: 1, 3>}, {transform_indices = @transform_5, window_bounds = array<i64: 8, 3>}]} {
    %c0 = arith.constant 0 : index
    %c0_0 = arith.constant 0 : index
    %0 = vector.load %arg1[%c0, %c0_0] : memref<8x2944xf32, #tpu.memory_space<vmem>>, vector<8x2944xf32>
    %1 = arith.truncf %0 : vector<8x2944xf32> to vector<8x2944xbf16>
    %c0_1 = arith.constant 0 : index
    %c0_2 = arith.constant 0 : index
    %2 = vector.load %arg2[%c0_1, %c0_2] : memref<2944x128xbf16, #tpu.memory_space<vmem>>, vector<2944x128xbf16>
    %cst = arith.constant dense<0.000000e+00> : vector<8x128xf32>
    %3 = tpu.matmul %1, %2, %cst {dimension_numbers = #tpu.dot_dimension_numbers<[1], [0], [0], [1], [0, 0, 1, 1], [], []>} : vector<8x2944xbf16>, vector<2944x128xbf16>, vector<8x128xf32> -> vector<8x128xf32>
    %c0_3 = arith.constant 0 : index
    %c0_4 = arith.constant 0 : index
    %4 = vector.load %arg3[%c0_3, %c0_4] : memref<1x128xf32, #tpu.memory_space<vmem>>, vector<1x128xf32>
    %5 = vector.broadcast %4 : vector<1x128xf32> to vector<8x128xf32>
    %6 = arith.addf %3, %5 : vector<8x128xf32>
    %cst_5 = arith.constant 0.000000e+00 : f32
    %7 = vector.broadcast %cst_5 : f32 to vector<8x128xf32>
    %8 = arith.maximumf %6, %7 : vector<8x128xf32>
    %c0_6 = arith.constant 0 : index
    %c0_7 = arith.constant 0 : index
    %9 = vector.load %arg4[%c0_6, %c0_7] : memref<128x3xf32, #tpu.memory_space<vmem>>, vector<128x3xf32>
    %cst_8 = arith.constant dense<0.000000e+00> : vector<8x3xf32>
    %10 = tpu.matmul %8, %9, %cst_8 {dimension_numbers = #tpu.dot_dimension_numbers<[1], [0], [0], [1], [0, 0, 1, 1], [], []>} : vector<8x128xf32>, vector<128x3xf32>, vector<8x3xf32> -> vector<8x3xf32>
    %c0_9 = arith.constant 0 : index
    %c0_10 = arith.constant 0 : index
    %11 = vector.load %arg5[%c0_9, %c0_10] : memref<1x3xf32, #tpu.memory_space<vmem>>, vector<1x3xf32>
    %12 = vector.broadcast %11 : vector<1x3xf32> to vector<8x3xf32>
    %13 = arith.addf %10, %12 : vector<8x3xf32>
    %cst_11 = arith.constant dense<0xFF800000> : vector<8xf32>
    %14 = vector.multi_reduction <maximumf>, %13, %cst_11 [1] : vector<8x3xf32> to vector<8xf32>
    %15 = vector.shape_cast %14 : vector<8xf32> to vector<8x1xf32>
    %16 = vector.broadcast %15 : vector<8x1xf32> to vector<8x3xf32>
    %17 = arith.subf %13, %16 : vector<8x3xf32>
    %18 = math.exp %17 : vector<8x3xf32>
    %cst_12 = arith.constant dense<0.000000e+00> : vector<8xf32>
    %19 = vector.multi_reduction <add>, %18, %cst_12 [1] : vector<8x3xf32> to vector<8xf32>
    %20 = vector.shape_cast %19 : vector<8xf32> to vector<8x1xf32>
    %21 = tpu.reciprocal %20 {approx = true} : vector<8x1xf32> -> vector<8x1xf32>
    %22 = vector.broadcast %21 : vector<8x1xf32> to vector<8x3xf32>
    %23 = arith.mulf %18, %22 : vector<8x3xf32>
    %c0_13 = arith.constant 0 : index
    %c0_14 = arith.constant 0 : index
    %24 = vector.load %arg6[%c0_13, %c0_14] : memref<8x3xf32, #tpu.memory_space<vmem>>, vector<8x3xf32>
    tpu.vector_store %arg6[%c0_13, %c0_14], %23 {strides = array<i32>} : memref<8x3xf32, #tpu.memory_space<vmem>>, vector<8x3xf32>,
    return
  }
  func.func @transform_0(%arg0: i32) -> (i32, i32) {
    %c0_i32 = arith.constant 0 : i32
    %c0_i32_0 = arith.constant 0 : i32
    return %arg0, %c0_i32 : i32, i32
  }
  func.func @transform_1(%arg0: i32) -> (i32, i32) {
    %c0_i32 = arith.constant 0 : i32
    %c0_i32_0 = arith.constant 0 : i32
    %c0_i32_1 = arith.constant 0 : i32
    return %c0_i32, %c0_i32_0 : i32, i32
  }
  func.func @transform_2(%arg0: i32) -> (i32, i32) {
    %c0_i32 = arith.constant 0 : i32
    %c0_i32_0 = arith.constant 0 : i32
    %c0_i32_1 = arith.constant 0 : i32
    return %c0_i32, %c0_i32_0 : i32, i32
  }
  func.func @transform_3(%arg0: i32) -> (i32, i32) {
    %c0_i32 = arith.constant 0 : i32
    %c0_i32_0 = arith.constant 0 : i32
    %c0_i32_1 = arith.constant 0 : i32
    return %c0_i32, %c0_i32_0 : i32, i32
  }
  func.func @transform_4(%arg0: i32) -> (i32, i32) {
    %c0_i32 = arith.constant 0 : i32
    %c0_i32_0 = arith.constant 0 : i32
    %c0_i32_1 = arith.constant 0 : i32
    return %c0_i32, %c0_i32_0 : i32, i32
  }
  func.func @transform_5(%arg0: i32) -> (i32, i32) {
    %c0_i32 = arith.constant 0 : i32
    %c0_i32_0 = arith.constant 0 : i32
    return %arg0, %c0_i32 : i32, i32
  }
}

</mosaic_0001>

<bundles_post_ra>
// kernel: domain_classifier_forward.1
= control target key start
LH: loop header
LB: loop body
LE: loop exit
PB: predicated region body
PF: predicated region fallthrough
CT: control target
= control target key end

     0   :  { %10 = vsyncpa [#allocation3], 0  ;;  %s2903_s18 = smov [#allocation2]   ;;  %s3092_s0 = inlined_call_operand.vmem [shape: f32[8,2944], index: 0, kind: input, shape index: {}]   ;;  %s3093_s1 = inlined_call_operand.hbm [shape: bf16[2944,128], index: 1, kind: input, shape index: {}]   ;;  %s3094_s2 = inlined_call_operand.vmem [shape: f32[1,128], index: 2, kind: input, shape index: {}]   ;;  %s3095_s3 = inlined_call_operand.vmem [shape: f32[128,3], index: 3, kind: input, shape index: {}]   ;;  %s3096_s4 = inlined_call_operand.vmem [shape: f32[1,3], index: 4, kind: input, shape index: {}]   ;;  %s3097_s5 = inlined_call_operand.vmem [shape: f32[8,3], index: 5, kind: output, shape index: {}]  }
   0x1   :  { %s18_s19 = sshll.u32 %s2903_s18, 4  ;;  %s2879_s22 = scalar_lea.hbm %s3093_s1, 23552  ;;  %s19_s19 = int_to_ptr.vmem [resolvable:$true] %s18_s19 }
   0x2   :  { %p2880_p0 = scmp.ne.s32.totalorder %s3093_s1, %s2879_s22  ;;  %p2883_p1 = scmp.lt.u32.totalorder %s2879_s22, %s3093_s1 }
   0x4   :  { %p2885_p2 = pnand %p2883_p1, %p2880_p0 }
   0x6   :  { %2888 = shalt.err (!%p2885_p2)
}
   0x7   :  { %s2889_s27 = scalar_lea.vmem %s19_s19, 23552  ;;  %p2894_p4 = scmp.lt.s32.totalorder %s19_s19, %s19_s19 }
   0x8   :  { %p2890_p3 = scmp.ne.s32.totalorder %s19_s19, %s2889_s27  ;;  %p2895_p5 = scmp.lt.s32.totalorder %s2889_s27, %s2889_s27 }
   0xa   :  { %p2896_p6 = por %p2895_p5, %p2894_p4 }
   0xc   :  { %p2897_p7 = pnand %p2896_p6, %p2890_p3 }
   0xe   :  { %2900 = shalt.err (!%p2897_p7)
}
   0xf   :  { %s2904_s28 = smov 64   ;;  %s2905_s29 = smov 4  }
  0x10   :  { %24 = dma.hbm_to_vmem [thread:$0]  %s3093_s1, 23552, %s19_s19, [#allocation3], %s2904_s28, %s2904_s28, %s2905_s29  }
  0x11   :  { %2901 = dma.done.wait [#allocation3], 23552  }
  0x12   :  { %2902 = vsyncadd [#allocation3], 4294943744  ;;  %v2691_v0 = vld [vmem:[#allocation2 + $0x40] sm:$0xff]   ;;  %v2695_v4 = vld [vmem:[#allocation2 + $0x48] sm:$0xff]   ;;  %vm2907_vm0 = vmmov 0   ;;  %vm2134_vm1 = vcmask 23552  }
  0x13   :  { %v2692_v1 = vld [vmem:[#allocation2] sm:$0xff]   ;;  %2338 = vmatprep.subr.bf16.mxu0 %v2691_v0  ;;  %v2696_v5 = vld [vmem:[#allocation2 + $0x8] sm:$0xff]   ;;  %v2699_v8 = vld [vmem:[#allocation2 + $0x50] sm:$0xff]  }
  0x14   :  { %v2693_v2 = vld [vmem:[#allocation2 + $0xc0] sm:$0xff]   ;;  %2339 = vmatpush3.bf16.msra.mxu0 %v2692_v1  ;;  %v2697_v6 = vld [vmem:[#allocation2 + $0xc8] sm:$0xff]   ;;  %v2700_v9 = vld [vmem:[#allocation2 + $0x10] sm:$0xff]  }
  0x15   :  { %v2694_v3 = vld [vmem:[#allocation2 + $0x80] sm:$0xff]   ;;  %2360 = vmatprep.subr.bf16.mxu1 %v2693_v2  ;;  %2340 = vmatprep.subr.bf16.mxu0 %v2695_v4  ;;  %v2698_v7 = vld [vmem:[#allocation2 + $0x88] sm:$0xff]   ;;  %v2701_v10 = vld [vmem:[#allocation2 + $0xd0] sm:$0xff]  }
  0x16   :  { %2361 = vmatpush3.bf16.msra.mxu1 %v2694_v3  ;;  %v2702_v11 = vld [vmem:[#allocation2 + $0x90] sm:$0xff]   ;;  %v2703_v12 = vld [vmem:[#allocation2 + $0x58] sm:$0xff]   ;;  %v2707_v16 = vld [vmem:[#allocation2 + $0x60] sm:$0xff]  }
  0x17   :  { %2362 = vmatprep.subr.bf16.mxu1 %v2697_v6  ;;  %v2704_v13 = vld [vmem:[#allocation2 + $0x18] sm:$0xff]   ;;  %v2708_v17 = vld [vmem:[#allocation2 + $0x20] sm:$0xff]   ;;  %v2711_v20 = vld [vmem:[#allocation2 + $0x68] sm:$0xff]  }
  0x18   :  { %2341 = vmatpush3.bf16.msra.mxu0 %v2696_v5  ;;  %v2705_v14 = vld [vmem:[#allocation2 + $0xd8] sm:$0xff]   ;;  %v2709_v18 = vld [vmem:[#allocation2 + $0xe0] sm:$0xff]   ;;  %v2712_v21 = vld [vmem:[#allocation2 + $0x28] sm:$0xff]  }
  0x19   :  { %2342 = vmatprep.subr.bf16.mxu0 %v2699_v8  ;;  %v2706_v15 = vld [vmem:[#allocation2 + $0x98] sm:$0xff]   ;;  %v2710_v19 = vld [vmem:[#allocation2 + $0xa0] sm:$0xff]   ;;  %v2713_v22 = vld [vmem:[#allocation2 + $0xe8] sm:$0xff]  }
  0x1a   :  { %2363 = vmatpush3.bf16.msra.mxu1 %v2698_v7  ;;  %v2714_v23 = vld [vmem:[#allocation2 + $0xa8] sm:$0xff]   ;;  %v2715_v24 = vld [vmem:[#allocation2 + $0x70] sm:$0xff]   ;;  %v2719_v28 = vld [vmem:[#allocation2 + $0x78] sm:$0xff]  }
  0x1b   :  { %2364 = vmatprep.subr.bf16.mxu1 %v2701_v10  ;;  %v2716_v25 = vld [vmem:[#allocation2 + $0x30] sm:$0xff]   ;;  %v2720_v29 = vld [vmem:[#allocation2 + $0x38] sm:$0xff]   ;;  %v36_v31 = vld [vmem:[%s3092_s0 + $0x8] sm:$0xff] }
  0x1c   :  { %2343 = vmatpush3.bf16.msra.mxu0 %v2700_v9  ;;  %v2717_v26 = vld [vmem:[#allocation2 + $0xf0] sm:$0xff]   ;;  %v2721_v30 = vld [vmem:[#allocation2 + $0xf8] sm:$0xff]   ;;  %v59_v32 = vpack.c.bf16 %v36_v31, %v36_v31  ;;  %v35_v34 = vld [vmem:[%s3092_s0] sm:$0xff] }
  0x1d   :  { %2344 = vmatprep.subr.bf16.mxu0 %v2703_v12  ;;  %v2718_v27 = vld [vmem:[#allocation2 + $0xb0] sm:$0xff]   ;;  %v2722_v33 = vld [vmem:[#allocation2 + $0xb8] sm:$0xff]   ;;  %v58_v35 = vpack.c.bf16 %v35_v34, %v35_v34  ;;  %v2723_v36 = vld [vmem:[#allocation2 + $0x140] sm:$0xff]  }
  0x1e   :  { %2365 = vmatpush3.bf16.msra.mxu1 %v2702_v11  ;;  %v38_v37 = vld [vmem:[%s3092_s0 + $0x18] sm:$0xff]  ;;  %1592 = vmatprep.mubr.bf16.mxu0 %v59_v32  ;;  %v2724_v39 = vld [vmem:[#allocation2 + $0x100] sm:$0xff]   ;;  %v37_v40 = vld [vmem:[%s3092_s0 + $0x10] sm:$0xff] }
  0x1f   :  { %2366 = vmatprep.subr.bf16.mxu1 %v2705_v14  ;;  %v61_v38 = vpack.c.bf16 %v38_v37, %v38_v37  ;;  %v60_v41 = vpack.c.bf16 %v37_v40, %v37_v40  ;;  %v2725_v42 = vld [vmem:[#allocation2 + $0x1c0] sm:$0xff]   ;;  %v2727_v44 = vld [vmem:[#allocation2 + $0x148] sm:$0xff]   ;;  %v2731_v48 = vld [vmem:[#allocation2 + $0x150] sm:$0xff]  }
  0x20   :  { %2345 = vmatpush3.bf16.msra.mxu0 %v2704_v13  ;;  %v2726_v43 = vld [vmem:[#allocation2 + $0x180] sm:$0xff]   ;;  %v2728_v45 = vld [vmem:[#allocation2 + $0x108] sm:$0xff]   ;;  %v2732_v49 = vld [vmem:[#allocation2 + $0x110] sm:$0xff]  }
  0x21   :  { %2346 = vmatprep.subr.bf16.mxu0 %v2707_v16  ;;  %1632 = vmatprep.mubr.bf16.mxu1 %v61_v38  ;;  %v2729_v46 = vld [vmem:[#allocation2 + $0x1c8] sm:$0xff]   ;;  %v2733_v50 = vld [vmem:[#allocation2 + $0x1d0] sm:$0xff]   ;;  %v2735_v52 = vld [vmem:[#allocation2 + $0x158] sm:$0xff]  }
  0x22   :  { %2367 = vmatpush3.bf16.msra.mxu1 %v2706_v15  ;;  %v2730_v47 = vld [vmem:[#allocation2 + $0x188] sm:$0xff]   ;;  %v2734_v51 = vld [vmem:[#allocation2 + $0x190] sm:$0xff]   ;;  %v2736_v53 = vld [vmem:[#allocation2 + $0x118] sm:$0xff]  }
  0x23   :  { %2368 = vmatprep.subr.bf16.mxu1 %v2709_v18  ;;  %v2737_v54 = vld [vmem:[#allocation2 + $0x1d8] sm:$0xff]   ;;  %v2739_v56 = vld [vmem:[#allocation2 + $0x160] sm:$0xff]   ;;  %v2743_v60 = vld [vmem:[#allocation2 + $0x168] sm:$0xff]  }
  0x24   :  { %2347 = vmatpush3.bf16.msra.mxu0 %v2708_v17  ;;  %v2738_v55 = vld [vmem:[#allocation2 + $0x198] sm:$0xff]   ;;  %v2740_v57 = vld [vmem:[#allocation2 + $0x120] sm:$0xff]   ;;  %v2744_v61 = vld [vmem:[#allocation2 + $0x128] sm:$0xff]  }
  0x25   :  { %2348 = vmatprep.subr.bf16.mxu0 %v2711_v20  ;;  %v2741_v58 = vld [vmem:[#allocation2 + $0x1e0] sm:$0xff]   ;;  %v2745_v62 = vld [vmem:[#allocation2 + $0x1e8] sm:$0xff]   ;;  %v2747_v0 = vld [vmem:[#allocation2 + $0x170] sm:$0xff]  }
  0x26   :  { %2369 = vmatpush3.bf16.msra.mxu1 %v2710_v19  ;;  %v2742_v59 = vld [vmem:[#allocation2 + $0x1a0] sm:$0xff]   ;;  %v2746_v63 = vld [vmem:[#allocation2 + $0x1a8] sm:$0xff]   ;;  %v2748_v1 = vld [vmem:[#allocation2 + $0x130] sm:$0xff]  }
  0x27   :  { %2370 = vmatprep.subr.bf16.mxu1 %v2713_v22  ;;  %v2749_v2 = vld [vmem:[#allocation2 + $0x1f0] sm:$0xff]   ;;  %v2751_v4 = vld [vmem:[#allocation2 + $0x178] sm:$0xff]   ;;  %v40_v7 = vld [vmem:[%s3092_s0 + $0x28] sm:$0xff] }
  0x28   :  { %2349 = vmatpush3.bf16.msra.mxu0 %v2712_v21  ;;  %v2750_v3 = vld [vmem:[#allocation2 + $0x1b0] sm:$0xff]   ;;  %v2752_v5 = vld [vmem:[#allocation2 + $0x138] sm:$0xff]   ;;  %v63_v8 = vpack.c.bf16 %v40_v7, %v40_v7  ;;  %v39_v10 = vld [vmem:[%s3092_s0 + $0x20] sm:$0xff] }
  0x29   :  { %2350 = vmatprep.subr.bf16.mxu0 %v2715_v24  ;;  %v2753_v6 = vld [vmem:[#allocation2 + $0x1f8] sm:$0xff]   ;;  %v62_v11 = vpack.c.bf16 %v39_v10, %v39_v10  ;;  %v2755_v12 = vld [vmem:[#allocation2 + $0x240] sm:$0xff]   ;;  %v41_v16 = vld [vmem:[%s3092_s0 + $0x30] sm:$0xff] }
  0x2a   :  { %2371 = vmatpush3.bf16.msra.mxu1 %v2714_v23  ;;  %v2754_v9 = vld [vmem:[#allocation2 + $0x1b8] sm:$0xff]   ;;  %v2756_v15 = vld [vmem:[#allocation2 + $0x200] sm:$0xff]   ;;  %v64_v17 = vpack.c.bf16 %v41_v16, %v41_v16  ;;  %v2759_v20 = vld [vmem:[#allocation2 + $0x248] sm:$0xff]  }
  0x2b   :  { %2372 = vmatprep.subr.bf16.mxu1 %v2717_v26  ;;  %v42_v13 = vld [vmem:[%s3092_s0 + $0x38] sm:$0xff]  ;;  %v2757_v18 = vld [vmem:[#allocation2 + $0x2c0] sm:$0xff]   ;;  %v2760_v21 = vld [vmem:[#allocation2 + $0x208] sm:$0xff]  }
  0x2c   :  { %2351 = vmatpush3.bf16.msra.mxu0 %v2716_v25  ;;  %v65_v14 = vpack.c.bf16 %v42_v13, %v42_v13  ;;  %v2758_v19 = vld [vmem:[#allocation2 + $0x280] sm:$0xff]   ;;  %v2761_v22 = vld [vmem:[#allocation2 + $0x2c8] sm:$0xff]   ;;  %v2763_v24 = vld [vmem:[#allocation2 + $0x250] sm:$0xff]  }
  0x2d   :  { %2352 = vmatprep.subr.bf16.mxu0 %v2719_v28  ;;  %v2762_v23 = vld [vmem:[#allocation2 + $0x288] sm:$0xff]   ;;  %v2764_v25 = vld [vmem:[#allocation2 + $0x210] sm:$0xff]   ;;  %v2767_v28 = vld [vmem:[#allocation2 + $0x258] sm:$0xff]  }
  0x2e   :  { %2373 = vmatpush3.bf16.msra.mxu1 %v2718_v27  ;;  %v2765_v26 = vld [vmem:[#allocation2 + $0x2d0] sm:$0xff]   ;;  %v2770_v31 = vld [vmem:[#allocation2 + $0x298] sm:$0xff]   ;;  %v2771_v32 = vld [vmem:[#allocation2 + $0x260] sm:$0xff]  }
  0x2f   :  { %2374 = vmatprep.subr.bf16.mxu1 %v2721_v30  ;;  %v2766_v27 = vld [vmem:[#allocation2 + $0x290] sm:$0xff]   ;;  %v2769_v30 = vld [vmem:[#allocation2 + $0x2d8] sm:$0xff]   ;;  %v2773_v34 = vld [vmem:[#allocation2 + $0x2e0] sm:$0xff]  }
  0x30   :  { %2353 = vmatpush3.bf16.msra.mxu0 %v2720_v29  ;;  %v2768_v29 = vld [vmem:[#allocation2 + $0x218] sm:$0xff]   ;;  %v2776_v37 = vld [vmem:[#allocation2 + $0x228] sm:$0xff]   ;;  %v2779_v40 = vld [vmem:[#allocation2 + $0x270] sm:$0xff]  }
  0x31   :  { %2382 = vmatprep.subr.bf16.mxu0 %v2723_v36  ;;  %v2775_v36 = vld [vmem:[#allocation2 + $0x268] sm:$0xff]   ;;  %v2802_v7 = vld [vmem:[#allocation2 + $0x398] sm:$0xff]   ;;  %v2805_v10 = vld [vmem:[#allocation2 + $0x3e0] sm:$0xff]  }
  0x32   :  { %2375 = vmatpush3.bf16.msra.mxu1 %v2722_v33  ;;  %v2772_v33 = vld [vmem:[#allocation2 + $0x220] sm:$0xff]   ;;  %v2777_v38 = vld [vmem:[#allocation2 + $0x2e8] sm:$0xff]   ;;  %v2811_v16 = vld [vmem:[#allocation2 + $0x370] sm:$0xff]  }
  0x33   :  { %1593 = vmatmul.mubr.bf16.vlgmr.msra.gmra.mrb[0].mxu0 %v58_v35  ;;  %2404 = vmatprep.subr.bf16.mxu1 %v2725_v42  ;;  %v2774_v35 = vld [vmem:[#allocation2 + $0x2a0] sm:$0xff]   ;;  %v2781_v42 = vld [vmem:[#allocation2 + $0x2f0] sm:$0xff]   ;;  %v2808_v13 = vld [vmem:[#allocation2 + $0x328] sm:$0xff]  }
  0x34   :  { %2383 = vmatpush3.bf16.msra.mxu0 %v2724_v39  ;;  %1672 = vmatprep.mubr.bf16.mxu0 %v63_v8  ;;  %v2778_v39 = vld [vmem:[#allocation2 + $0x2a8] sm:$0xff]   ;;  %v2803_v8 = vld [vmem:[#allocation2 + $0x360] sm:$0xff]  }
  0x35   :  { %1633 = vmatmul.mubr.bf16.vlgmr.msra.gmra.mrb[0].mxu1 %v60_v41  ;;  %2384 = vmatprep.subr.bf16.mxu0 %v2727_v44  ;;  %v2780_v41 = vld [vmem:[#allocation2 + $0x230] sm:$0xff]   ;;  %v2783_v44 = vld [vmem:[#allocation2 + $0x278] sm:$0xff]  }
  0x36   :  { %2405 = vmatpush3.bf16.msra.mxu1 %v2726_v43  ;;  %1712 = vmatprep.mubr.bf16.mxu1 %v65_v14  ;;  %v2782_v43 = vld [vmem:[#allocation2 + $0x2b0] sm:$0xff]   ;;  %v2809_v14 = vld [vmem:[#allocation2 + $0x3e8] sm:$0xff]  }
  0x37   :  { %2406 = vmatprep.subr.bf16.mxu1 %v2729_v46  ;;  %v2785_v46 = vld [vmem:[#allocation2 + $0x2f8] sm:$0xff]  }
  0x38   :  { %2385 = vmatpush3.bf16.msra.mxu0 %v2728_v45  ;;  %v2784_v45 = vld [vmem:[#allocation2 + $0x238] sm:$0xff]  }
  0x39   :  { %2386 = vmatprep.subr.bf16.mxu0 %v2731_v48 }
  0x3a   :  { %2407 = vmatpush3.bf16.msra.mxu1 %v2730_v47  ;;  %v44_v47 = vld [vmem:[%s3092_s0 + $0x48] sm:$0xff] }
  0x3b   :  { %2408 = vmatprep.subr.bf16.mxu1 %v2733_v50  ;;  %v67_v48 = vpack.c.bf16 %v44_v47, %v44_v47  ;;  %v43_v50 = vld [vmem:[%s3092_s0 + $0x40] sm:$0xff]  ;;  %v2834_v47 = vld [vmem:[#allocation2 + $0x498] sm:$0xff]  }
  0x3c   :  { %2387 = vmatpush3.bf16.msra.mxu0 %v2732_v49  ;;  %v2786_v49 = vld [vmem:[#allocation2 + $0x2b8] sm:$0xff]  }
  0x3d   :  { %2388 = vmatprep.subr.bf16.mxu0 %v2735_v52  ;;  %v2787_v52 = vld [vmem:[#allocation2 + $0x340] sm:$0xff]  }
  0x3e   :  { %2409 = vmatpush3.bf16.msra.mxu1 %v2734_v51  ;;  %v66_v51 = vpack.c.bf16 %v43_v50, %v43_v50  ;;  %v2837_v50 = vld [vmem:[#allocation2 + $0x4e0] sm:$0xff]  }
  0x3f   :  { %2410 = vmatprep.subr.bf16.mxu1 %v2737_v54 }
  0x40   :  { %2389 = vmatpush3.bf16.msra.mxu0 %v2736_v53  ;;  %v46_v53 = vld [vmem:[%s3092_s0 + $0x58] sm:$0xff] }
  0x41   :  { %2390 = vmatprep.subr.bf16.mxu0 %v2739_v56  ;;  %v69_v54 = vpack.c.bf16 %v46_v53, %v46_v53  ;;  %v45_v56 = vld [vmem:[%s3092_s0 + $0x50] sm:$0xff]  ;;  %v2840_v53 = vld [vmem:[#allocation2 + $0x428] sm:$0xff]  }
  0x42   :  { %2411 = vmatpush3.bf16.msra.mxu1 %v2738_v55  ;;  %v2788_v55 = vld [vmem:[#allocation2 + $0x300] sm:$0xff]  }
  0x43   :  { %2412 = vmatprep.subr.bf16.mxu1 %v2741_v58  ;;  %v2789_v58 = vld [vmem:[#allocation2 + $0x3c0] sm:$0xff]  }
  0x44   :  { %2391 = vmatpush3.bf16.msra.mxu0 %v2740_v57  ;;  %v68_v57 = vpack.c.bf16 %v45_v56, %v45_v56  ;;  %v2843_v56 = vld [vmem:[#allocation2 + $0x470] sm:$0xff]  }
  0x45   :  { %2392 = vmatprep.subr.bf16.mxu0 %v2743_v60  ;;  %v2791_v60 = vld [vmem:[#allocation2 + $0x348] sm:$0xff]  }
  0x46   :  { %2413 = vmatpush3.bf16.msra.mxu1 %v2742_v59  ;;  %v2790_v59 = vld [vmem:[#allocation2 + $0x380] sm:$0xff]  }
  0x47   :  { %2414 = vmatprep.subr.bf16.mxu1 %v2745_v62  ;;  %v2793_v62 = vld [vmem:[#allocation2 + $0x3c8] sm:$0xff]  }
  0x48   :  { %2393 = vmatpush3.bf16.msra.mxu0 %v2744_v61  ;;  %v2792_v61 = vld [vmem:[#allocation2 + $0x308] sm:$0xff]  }
  0x49   :  { %2394 = vmatprep.subr.bf16.mxu0 %v2747_v0  ;;  %v2795_v0 = vld [vmem:[#allocation2 + $0x350] sm:$0xff]  }
  0x4a   :  { %2415 = vmatpush3.bf16.msra.mxu1 %v2746_v63  ;;  %v2794_v63 = vld [vmem:[#allocation2 + $0x388] sm:$0xff]  }
  0x4b   :  { %2416 = vmatprep.subr.bf16.mxu1 %v2749_v2  ;;  %v2797_v2 = vld [vmem:[#allocation2 + $0x3d0] sm:$0xff]  }
  0x4c   :  { %2395 = vmatpush3.bf16.msra.mxu0 %v2748_v1  ;;  %v2796_v1 = vld [vmem:[#allocation2 + $0x310] sm:$0xff]  }
  0x4d   :  { %2396 = vmatprep.subr.bf16.mxu0 %v2751_v4  ;;  %v2799_v4 = vld [vmem:[#allocation2 + $0x358] sm:$0xff]  }
  0x4e   :  { %2417 = vmatpush3.bf16.msra.mxu1 %v2750_v3  ;;  %v2798_v3 = vld [vmem:[#allocation2 + $0x390] sm:$0xff]  }
  0x4f   :  { %2418 = vmatprep.subr.bf16.mxu1 %v2753_v6  ;;  %v2801_v6 = vld [vmem:[#allocation2 + $0x3d8] sm:$0xff]  }
  0x50   :  { %2397 = vmatpush3.bf16.msra.mxu0 %v2752_v5  ;;  %v2800_v5 = vld [vmem:[#allocation2 + $0x318] sm:$0xff]  }
  0x51   :  { %2426 = vmatprep.subr.bf16.mxu0 %v2755_v12  ;;  %v2807_v12 = vld [vmem:[#allocation2 + $0x368] sm:$0xff]  }
  0x52   :  { %2419 = vmatpush3.bf16.msra.mxu1 %v2754_v9  ;;  %v2804_v9 = vld [vmem:[#allocation2 + $0x320] sm:$0xff]  }
  0x53   :  { %1673 = vmatmul.mubr.bf16.vlgmr.msra.gmra.mrb[4].mxu0 %v62_v11  ;;  %2448 = vmatprep.subr.bf16.mxu1 %v2757_v18  ;;  %v2806_v11 = vld [vmem:[#allocation2 + $0x3a0] sm:$0xff]   ;;  %v2813_v18 = vld [vmem:[#allocation2 + $0x3f0] sm:$0xff]  }
  0x54   :  { %2427 = vmatpush3.bf16.msra.mxu0 %v2756_v15  ;;  %1752 = vmatprep.mubr.bf16.mxu0 %v67_v48  ;;  %v2810_v15 = vld [vmem:[#allocation2 + $0x3a8] sm:$0xff]   ;;  %v2835_v48 = vld [vmem:[#allocation2 + $0x460] sm:$0xff]  }
  0x55   :  { %1713 = vmatmul.mubr.bf16.vlgmr.msra.gmra.mrb[4].mxu1 %v64_v17  ;;  %2428 = vmatprep.subr.bf16.mxu0 %v2759_v20  ;;  %v2812_v17 = vld [vmem:[#allocation2 + $0x330] sm:$0xff]   ;;  %v2815_v20 = vld [vmem:[#allocation2 + $0x378] sm:$0xff]  }
  0x56   :  { %2449 = vmatpush3.bf16.msra.mxu1 %v2758_v19  ;;  %1792 = vmatprep.mubr.bf16.mxu1 %v69_v54  ;;  %v2814_v19 = vld [vmem:[#allocation2 + $0x3b0] sm:$0xff]   ;;  %v2841_v54 = vld [vmem:[#allocation2 + $0x4e8] sm:$0xff]  }
  0x57   :  { %2450 = vmatprep.subr.bf16.mxu1 %v2761_v22  ;;  %v2817_v22 = vld [vmem:[#allocation2 + $0x3f8] sm:$0xff]  }
  0x58   :  { %2429 = vmatpush3.bf16.msra.mxu0 %v2760_v21  ;;  %v2816_v21 = vld [vmem:[#allocation2 + $0x338] sm:$0xff]  }
  0x59   :  { %2430 = vmatprep.subr.bf16.mxu0 %v2763_v24 }
  0x5a   :  { %2451 = vmatpush3.bf16.msra.mxu1 %v2762_v23  ;;  %v48_v23 = vld [vmem:[%s3092_s0 + $0x68] sm:$0xff] }
  0x5b   :  { %2452 = vmatprep.subr.bf16.mxu1 %v2765_v26  ;;  %v71_v24 = vpack.c.bf16 %v48_v23, %v48_v23  ;;  %v47_v26 = vld [vmem:[%s3092_s0 + $0x60] sm:$0xff]  ;;  %v2866_v23 = vld [vmem:[#allocation2 + $0x568] sm:$0xff]  }
  0x5c   :  { %2431 = vmatpush3.bf16.msra.mxu0 %v2764_v25  ;;  %v2818_v25 = vld [vmem:[#allocation2 + $0x3b8] sm:$0xff]  }
  0x5d   :  { %2432 = vmatprep.subr.bf16.mxu0 %v2767_v28  ;;  %v2819_v28 = vld [vmem:[#allocation2 + $0x440] sm:$0xff]  }
  0x5e   :  { %2453 = vmatpush3.bf16.msra.mxu1 %v2766_v27  ;;  %v70_v27 = vpack.c.bf16 %v47_v26, %v47_v26  ;;  %v2869_v26 = vld [vmem:[#allocation2 + $0x570] sm:$0xff]  }
  0x5f   :  { %2454 = vmatprep.subr.bf16.mxu1 %v2769_v30 }
  0x60   :  { %2433 = vmatpush3.bf16.msra.mxu0 %v2768_v29  ;;  %v50_v29 = vld [vmem:[%s3092_s0 + $0x78] sm:$0xff] }
  0x61   :  { %2434 = vmatprep.subr.bf16.mxu0 %v2771_v32  ;;  %v73_v30 = vpack.c.bf16 %v50_v29, %v50_v29  ;;  %v49_v32 = vld [vmem:[%s3092_s0 + $0x70] sm:$0xff] }
  0x62   :  { %2455 = vmatpush3.bf16.msra.mxu1 %v2770_v31  ;;  %v2820_v31 = vld [vmem:[#allocation2 + $0x400] sm:$0xff]   ;;  %v2870_v29 = vld [vmem:[#allocation2 + $0x530] sm:$0xff]  }
  0x63   :  { %2456 = vmatprep.subr.bf16.mxu1 %v2773_v34  ;;  %v2821_v34 = vld [vmem:[#allocation2 + $0x4c0] sm:$0xff]  }
  0x64   :  { %2435 = vmatpush3.bf16.msra.mxu0 %v2772_v33  ;;  %v72_v33 = vpack.c.bf16 %v49_v32, %v49_v32  ;;  %v2871_v32 = vld [vmem:[#allocation2 + $0x5b0] sm:$0xff]  }
  0x65   :  { %2436 = vmatprep.subr.bf16.mxu0 %v2775_v36  ;;  %v2823_v36 = vld [vmem:[#allocation2 + $0x448] sm:$0xff]  }
  0x66   :  { %2457 = vmatpush3.bf16.msra.mxu1 %v2774_v35  ;;  %v2822_v35 = vld [vmem:[#allocation2 + $0x480] sm:$0xff]  }
  0x67   :  { %2458 = vmatprep.subr.bf16.mxu1 %v2777_v38  ;;  %v2825_v38 = vld [vmem:[#allocation2 + $0x4c8] sm:$0xff]  }
  0x68   :  { %2437 = vmatpush3.bf16.msra.mxu0 %v2776_v37  ;;  %v2824_v37 = vld [vmem:[#allocation2 + $0x408] sm:$0xff]  }
  0x69   :  { %2438 = vmatprep.subr.bf16.mxu0 %v2779_v40  ;;  %v2827_v40 = vld [vmem:[#allocation2 + $0x450] sm:$0xff]  }
  0x6a   :  { %2459 = vmatpush3.bf16.msra.mxu1 %v2778_v39  ;;  %v2826_v39 = vld [vmem:[#allocation2 + $0x488] sm:$0xff]  }
  0x6b   :  { %2460 = vmatprep.subr.bf16.mxu1 %v2781_v42  ;;  %v2829_v42 = vld [vmem:[#allocation2 + $0x4d0] sm:$0xff]  }
  0x6c   :  { %2439 = vmatpush3.bf16.msra.mxu0 %v2780_v41  ;;  %v2828_v41 = vld [vmem:[#allocation2 + $0x410] sm:$0xff]  }
  0x6d   :  { %2440 = vmatprep.subr.bf16.mxu0 %v2783_v44  ;;  %v2831_v44 = vld [vmem:[#allocation2 + $0x458] sm:$0xff]  }
  0x6e   :  { %2461 = vmatpush3.bf16.msra.mxu1 %v2782_v43  ;;  %v2830_v43 = vld [vmem:[#allocation2 + $0x490] sm:$0xff]  }
  0x6f   :  { %2462 = vmatprep.subr.bf16.mxu1 %v2785_v46  ;;  %v2833_v46 = vld [vmem:[#allocation2 + $0x4d8] sm:$0xff]  }
  0x70   :  { %2441 = vmatpush3.bf16.msra.mxu0 %v2784_v45  ;;  %v2832_v45 = vld [vmem:[#allocation2 + $0x418] sm:$0xff]  }
  0x71   :  { %2470 = vmatprep.subr.bf16.mxu0 %v2787_v52  ;;  %v2839_v52 = vld [vmem:[#allocation2 + $0x468] sm:$0xff]  }
  0x72   :  { %2463 = vmatpush3.bf16.msra.mxu1 %v2786_v49  ;;  %v2836_v49 = vld [vmem:[#allocation2 + $0x420] sm:$0xff]  }
  0x73   :  { %1753 = vmatmul.mubr.bf16.vlgmr.msra.gmra.mrb[8].mxu0 %v66_v51  ;;  %2492 = vmatprep.subr.bf16.mxu1 %v2789_v58  ;;  %v2838_v51 = vld [vmem:[#allocation2 + $0x4a0] sm:$0xff]   ;;  %v2845_v58 = vld [vmem:[#allocation2 + $0x4f0] sm:$0xff]  }
  0x74   :  { %2471 = vmatpush3.bf16.msra.mxu0 %v2788_v55  ;;  %1832 = vmatprep.mubr.bf16.mxu0 %v71_v24  ;;  %v2842_v55 = vld [vmem:[#allocation2 + $0x4a8] sm:$0xff]   ;;  %v2865_v24 = vld [vmem:[#allocation2 + $0x5a0] sm:$0xff]  }
  0x75   :  { %1793 = vmatmul.mubr.bf16.vlgmr.msra.gmra.mrb[8].mxu1 %v68_v57  ;;  %2472 = vmatprep.subr.bf16.mxu0 %v2791_v60  ;;  %v2844_v57 = vld [vmem:[#allocation2 + $0x430] sm:$0xff]   ;;  %v2847_v60 = vld [vmem:[#allocation2 + $0x478] sm:$0xff]  }
  0x76   :  { %2493 = vmatpush3.bf16.msra.mxu1 %v2790_v59  ;;  %1872 = vmatprep.mubr.bf16.mxu1 %v73_v30  ;;  %v2846_v59 = vld [vmem:[#allocation2 + $0x4b0] sm:$0xff]  }
  0x77   :  { %2494 = vmatprep.subr.bf16.mxu1 %v2793_v62  ;;  %v2849_v62 = vld [vmem:[#allocation2 + $0x4f8] sm:$0xff]  }
  0x78   :  { %2473 = vmatpush3.bf16.msra.mxu0 %v2792_v61  ;;  %v2848_v61 = vld [vmem:[#allocation2 + $0x438] sm:$0xff]  }
  0x79   :  { %2474 = vmatprep.subr.bf16.mxu0 %v2795_v0 }
  0x7a   :  { %2495 = vmatpush3.bf16.msra.mxu1 %v2794_v63  ;;  %v52_v63 = vld [vmem:[%s3092_s0 + $0x88] sm:$0xff] }
  0x7b   :  { %2496 = vmatprep.subr.bf16.mxu1 %v2797_v2  ;;  %v75_v0 = vpack.c.bf16 %v52_v63, %v52_v63  ;;  %v51_v2 = vld [vmem:[%s3092_s0 + $0x80] sm:$0xff]  ;;  %v2048_v63 = vld [vmem:[%s3095_s3 + $0x38] sm:$0xff] }
  0x7c   :  { %2475 = vmatpush3.bf16.msra.mxu0 %v2796_v1  ;;  %v2850_v1 = vld [vmem:[#allocation2 + $0x4b8] sm:$0xff]  }
  0x7d   :  { %2476 = vmatprep.subr.bf16.mxu0 %v2799_v4  ;;  %v2851_v4 = vld [vmem:[#allocation2 + $0x540] sm:$0xff]  }
  0x7e   :  { %2497 = vmatpush3.bf16.msra.mxu1 %v2798_v3  ;;  %v74_v3 = vpack.c.bf16 %v51_v2, %v51_v2  ;;  %v2050_v2 = vld [vmem:[%s3095_s3 + $0x48] sm:$0xff] }
  0x7f   :  { %2498 = vmatprep.subr.bf16.mxu1 %v2801_v6 }
  0x80   :  { %2477 = vmatpush3.bf16.msra.mxu0 %v2800_v5  ;;  %v54_v5 = vld [vmem:[%s3092_s0 + $0x98] sm:$0xff] }
  0x81   :  { %2478 = vmatprep.subr.bf16.mxu0 %v2803_v8  ;;  %v77_v6 = vpack.c.bf16 %v54_v5, %v54_v5  ;;  %v53_v8 = vld [vmem:[%s3092_s0 + $0x90] sm:$0xff]  ;;  %v2052_v5 = vld [vmem:[%s3095_s3 + $0x58] sm:$0xff] }
  0x82   :  { %2499 = vmatpush3.bf16.msra.mxu1 %v2802_v7  ;;  %v2852_v7 = vld [vmem:[#allocation2 + $0x500] sm:$0xff]  }
  0x83   :  { %2500 = vmatprep.subr.bf16.mxu1 %v2805_v10  ;;  %v2906_v10 = vmov 0.0  }
  0x84   :  { %2479 = vmatpush3.bf16.msra.mxu0 %v2804_v9  ;;  %v76_v9 = vpack.c.bf16 %v53_v8, %v53_v8 }
  0x85   :  { %2480 = vmatprep.subr.bf16.mxu0 %v2807_v12  ;;  %v2854_v12 = vld [vmem:[#allocation2 + $0x548] sm:$0xff]  }
  0x86   :  { %2501 = vmatpush3.bf16.msra.mxu1 %v2806_v11  ;;  %v2853_v11 = vld [vmem:[#allocation2 + $0x580] sm:$0xff]  }
  0x87   :  { %2502 = vmatprep.subr.bf16.mxu1 %v2809_v14  ;;  %v2856_v14 = vld [vmem:[#allocation2 + $0x588] sm:$0xff]  }
  0x88   :  { %2481 = vmatpush3.bf16.msra.mxu0 %v2808_v13  ;;  %v2855_v13 = vld [vmem:[#allocation2 + $0x508] sm:$0xff]  }
  0x89   :  { %2482 = vmatprep.subr.bf16.mxu0 %v2811_v16  ;;  %v2858_v16 = vld [vmem:[#allocation2 + $0x510] sm:$0xff]  }
  0x8a   :  { %2503 = vmatpush3.bf16.msra.mxu1 %v2810_v15  ;;  %v2857_v15 = vld [vmem:[#allocation2 + $0x550] sm:$0xff]  }
  0x8b   :  { %2504 = vmatprep.subr.bf16.mxu1 %v2813_v18  ;;  %v2860_v18 = vld [vmem:[#allocation2 + $0x558] sm:$0xff]  }
  0x8c   :  { %2483 = vmatpush3.bf16.msra.mxu0 %v2812_v17  ;;  %v2859_v17 = vld [vmem:[#allocation2 + $0x590] sm:$0xff]  }
  0x8d   :  { %2484 = vmatprep.subr.bf16.mxu0 %v2815_v20  ;;  %v2863_v20 = vld [vmem:[#allocation2 + $0x560] sm:$0xff]  }
  0x8e   :  { %2505 = vmatpush3.bf16.msra.mxu1 %v2814_v19  ;;  %v2861_v19 = vld [vmem:[#allocation2 + $0x518] sm:$0xff]  }
  0x8f   :  { %2506 = vmatprep.subr.bf16.mxu1 %v2817_v22  ;;  %v2864_v22 = vld [vmem:[#allocation2 + $0x520] sm:$0xff]  }
  0x90   :  { %2485 = vmatpush3.bf16.msra.mxu0 %v2816_v21  ;;  %v2862_v21 = vld [vmem:[#allocation2 + $0x598] sm:$0xff]  }
  0x91   :  { %2514 = vmatprep.subr.bf16.mxu0 %v2819_v28  ;;  %v56_v28 = vld [vmem:[%s3092_s0 + $0xa8] sm:$0xff] }
  0x92   :  { %2507 = vmatpush3.bf16.msra.mxu1 %v2818_v25  ;;  %v2867_v25 = vld [vmem:[#allocation2 + $0x528] sm:$0xff]   ;;  %v79_v30 = vpack.c.bf16 %v56_v28, %v56_v28 }
  0x93   :  { %1833 = vmatmul.mubr.bf16.vlgmr.msra.gmra.mrb[12].mxu0 %v70_v27  ;;  %2536 = vmatprep.subr.bf16.mxu1 %v2821_v34  ;;  %v2868_v27 = vld [vmem:[#allocation2 + $0x5a8] sm:$0xff]   ;;  %v55_v34 = vld [vmem:[%s3092_s0 + $0xa0] sm:$0xff] }
  0x94   :  { %2515 = vmatpush3.bf16.msra.mxu0 %v2820_v31  ;;  %1912 = vmatprep.mubr.bf16.mxu0 %v75_v0  ;;  %v2872_v31 = vld [vmem:[#allocation2 + $0x578] sm:$0xff]  }
  0x95   :  { %1873 = vmatmul.mubr.bf16.vlgmr.msra.gmra.mrb[12].mxu1 %v72_v33  ;;  %2516 = vmatprep.subr.bf16.mxu0 %v2823_v36  ;;  %v2873_v33 = vld [vmem:[#allocation2 + $0x538] sm:$0xff]   ;;  %v57_v36 = vld [vmem:[%s3092_s0 + $0xb0] sm:$0xff] }
  0x96   :  { %2537 = vmatpush3.bf16.msra.mxu1 %v2822_v35  ;;  %1952 = vmatprep.mubr.bf16.mxu1 %v77_v6  ;;  %v2874_v35 = vld [vmem:[#allocation2 + $0x5b8] sm:$0xff]  }
  0x97   :  { %2538 = vmatprep.subr.bf16.mxu1 %v2825_v38  ;;  %v80_v38 = vpack.c.bf16 %v57_v36, %v57_v36 }
  0x98   :  { %2517 = vmatpush3.bf16.msra.mxu0 %v2824_v37  ;;  %v78_v37 = vpack.c.bf16 %v55_v34, %v55_v34 }
  0x99   :  { %2518 = vmatprep.subr.bf16.mxu0 %v2827_v40  ;;  %v2152_v40 = vld [vmem:[%s3094_s2] ss:$0 sm:$0xff] }
  0x9a   :  { %2539 = vmatpush3.bf16.msra.mxu1 %v2826_v39 }
  0x9b   :  { %2540 = vmatprep.subr.bf16.mxu1 %v2829_v42 }
  0x9c   :  { %2519 = vmatpush3.bf16.msra.mxu0 %v2828_v41 }
  0x9d   :  { %2520 = vmatprep.subr.bf16.mxu0 %v2831_v44 }
  0x9e   :  { %2541 = vmatpush3.bf16.msra.mxu1 %v2830_v43 }
  0x9f   :  { %2542 = vmatprep.subr.bf16.mxu1 %v2833_v46 }
  0xa0   :  { %2521 = vmatpush3.bf16.msra.mxu0 %v2832_v45 }
  0xa1   :  { %2522 = vmatprep.subr.bf16.mxu0 %v2835_v48 }
  0xa2   :  { %2543 = vmatpush3.bf16.msra.mxu1 %v2834_v47 }
  0xa3   :  { %2544 = vmatprep.subr.bf16.mxu1 %v2837_v50 }
  0xa4   :  { %2523 = vmatpush3.bf16.msra.mxu0 %v2836_v49 }
  0xa5   :  { %2524 = vmatprep.subr.bf16.mxu0 %v2839_v52  ;;  %v2041_v52 = vld [vmem:[%s3095_s3] sm:$0xff] }
  0xa6   :  { %2545 = vmatpush3.bf16.msra.mxu1 %v2838_v51 }
  0xa7   :  { %2546 = vmatprep.subr.bf16.mxu1 %v2841_v54  ;;  %v2043_v54 = vld [vmem:[%s3095_s3 + $0x10] sm:$0xff] }
  0xa8   :  { %2525 = vmatpush3.bf16.msra.mxu0 %v2840_v53  ;;  %v2042_v53 = vld [vmem:[%s3095_s3 + $0x8] sm:$0xff] }
  0xa9   :  { %2526 = vmatprep.subr.bf16.mxu0 %v2843_v56  ;;  %v2662_v56 = vpack.c.bf16 %v2042_v53, %v2041_v52 }
  0xaa   :  { %2547 = vmatpush3.bf16.msra.mxu1 %v2842_v55  ;;  %v2908_v55 = vmov 0.0|0.0  }
  0xab   :  { %2548 = vmatprep.subr.bf16.mxu1 %v2845_v58 }
  0xac   :  { %2527 = vmatpush3.bf16.msra.mxu0 %v2844_v57  ;;  %v2044_v57 = vld [vmem:[%s3095_s3 + $0x18] sm:$0xff] }
  0xad   :  { %2528 = vmatprep.subr.bf16.mxu0 %v2847_v60  ;;  %v2665_v58 = vpack.c.bf16 %v2044_v57, %v2043_v54  ;;  %v2046_v60 = vld [vmem:[%s3095_s3 + $0x28] sm:$0xff] }
  0xae   :  { %2549 = vmatpush3.bf16.msra.mxu1 %v2846_v59  ;;  %v2045_v59 = vld [vmem:[%s3095_s3 + $0x20] sm:$0xff] }
  0xaf   :  { %2550 = vmatprep.subr.bf16.mxu1 %v2849_v62  ;;  %v2047_v62 = vld [vmem:[%s3095_s3 + $0x30] sm:$0xff] }
  0xb0   :  { %2529 = vmatpush3.bf16.msra.mxu0 %v2848_v61  ;;  %v2668_v61 = vpack.c.bf16 %v2046_v60, %v2045_v59  ;;  %v2671_v0 = vpack.c.bf16 %v2048_v63, %v2047_v62 }
  0xb1   :  { %2558 = vmatprep.subr.bf16.mxu0 %v2851_v4  ;;  %v2051_v4 = vld [vmem:[%s3095_s3 + $0x50] sm:$0xff] }
  0xb2   :  { %2551 = vmatpush3.bf16.msra.mxu1 %v2850_v1  ;;  %v2049_v1 = vld [vmem:[%s3095_s3 + $0x40] sm:$0xff]  ;;  %v2677_v6 = vpack.c.bf16 %v2052_v5, %v2051_v4 }
  0xb3   :  { %1913 = vmatmul.mubr.bf16.vlgmr.msra.gmra.mrb[16].mxu0 %v74_v3  ;;  %2606 = vmatprep.subr.bf16.mxu1 %v2906_v10  ;;  %v2674_v3 = vpack.c.bf16 %v2050_v2, %v2049_v1 }
  0xb4   :  { %2559 = vmatpush3.bf16.msra.mxu0 %v2852_v7  ;;  %1992 = vmatprep.mubr.bf16.mxu0 %v79_v30 }
  0xb5   :  { %1953 = vmatmul.mubr.bf16.vlgmr.msra.gmra.mrb[16].mxu1 %v76_v9  ;;  %2560 = vmatprep.subr.bf16.mxu0 %v2854_v12 }
  0xb6   :  { %2607 = vmatpush3.bf16.msra.mxu1 %v2853_v11  ;;  %2622 = vmatprep.mubr.msk.bf16.mxu1 %vm2907_vm0, %v2906_v10 }
  0xb7   :  { %2608 = vmatprep.subr.bf16.mxu1 %v2906_v10 }
  0xb8   :  { %2561 = vmatpush3.bf16.msra.mxu0 %v2855_v13 }
  0xb9   :  { %2562 = vmatprep.subr.bf16.mxu0 %v2857_v15 }
  0xba   :  { %2609 = vmatpush3.bf16.msra.mxu1 %v2856_v14 }
  0xbb   :  { %2610 = vmatprep.subr.bf16.mxu1 %v2906_v10 }
  0xbc   :  { %2563 = vmatpush3.bf16.msra.mxu0 %v2858_v16 }
  0xbd   :  { %2564 = vmatprep.subr.bf16.mxu0 %v2860_v18  ;;  %v2054_v18 = vld [vmem:[%s3095_s3 + $0x68] sm:$0xff] }
  0xbe   :  { %2611 = vmatpush3.bf16.msra.mxu1 %v2859_v17  ;;  %v2053_v17 = vld [vmem:[%s3095_s3 + $0x60] sm:$0xff] }
  0xbf   :  { %2612 = vmatprep.subr.bf16.mxu1 %v2906_v10 }
  0xc0   :  { %2565 = vmatpush3.bf16.msra.mxu0 %v2861_v19 }
  0xc1   :  { %2566 = vmatprep.subr.bf16.mxu0 %v2863_v20  ;;  %v2680_v20 = vpack.c.bf16 %v2054_v18, %v2053_v17 }
  0xc2   :  { %2613 = vmatpush3.bf16.msra.mxu1 %v2862_v21 }
  0xc3   :  { %2614 = vmatprep.subr.bf16.mxu1 %v2906_v10 }
  0xc4   :  { %2567 = vmatpush3.bf16.msra.mxu0 %v2864_v22  ;;  %v2055_v22 = vld [vmem:[%s3095_s3 + $0x70] sm:$0xff] }
  0xc5   :  { %2568 = vmatprep.subr.bf16.mxu0 %v2866_v23  ;;  %v2056_v23 = vld [vmem:[%s3095_s3 + $0x78] sm:$0xff] }
  0xc6   :  { %2615 = vmatpush3.bf16.msra.mxu1 %v2865_v24  ;;  %v2683_v24 = vpack.c.bf16 %v2056_v23, %v2055_v22 }
  0xc7   :  { %2616 = vmatprep.subr.bf16.mxu1 %v2906_v10 }
  0xc8   :  { %2569 = vmatpush3.bf16.msra.mxu0 %v2867_v25 }
  0xc9   :  { %2570 = vmatprep.subr.bf16.mxu0 %v2869_v26 }
  0xca   :  { %2617 = vmatpush3.bf16.msra.mxu1 %v2868_v27 }
  0xcb   :  { %2618 = vmatprep.subr.bf16.mxu1 %v2906_v10 }
  0xcc   :  { %2571 = vmatpush3.bf16.msra.mxu0 %v2870_v29 }
  0xcd   :  { %2572 = vmatprep.subr.bf16.mxu0 %v2872_v31 }
  0xce   :  { %2619 = vmatpush3.bf16.msra.mxu1 %v2871_v32 }
  0xcf   :  { %2620 = vmatprep.subr.bf16.mxu1 %v2906_v10 }
  0xd0   :  { %2573 = vmatpush3.bf16.msra.mxu0 %v2873_v33 }
  0xd1   :  { %2661 = vmatprep.subr.bf16.mxu0 %v2908_v55 }
  0xd2   :  { %2621 = vmatpush3.bf16.msra.mxu1 %v2874_v35 }
  0xd3   :  { %1993 = vmatmul.mubr.bf16.vlgmr.msra.gmra.mrb[20].mxu0 %v78_v37 }
  0xd4   :  { %2658 = vmatprep.mubr.msk.f32.mxu0 %vm2907_vm0, %v2906_v10  ;;  %2663 = vmatpush3.bf16.msra.mxu0 %v2662_v56 }
  0xd5   :  { %2623 = vmatmul.mubr.bf16.vlgmr.msra.gmra.mrb[20].mxu1 %v80_v38  ;;  %2664 = vmatprep.subr.bf16.mxu0 %v2908_v55 }
  0xd8   :  { %2666 = vmatpush3.bf16.msra.mxu0 %v2665_v58 }
  0xd9   :  { %2667 = vmatprep.subr.bf16.mxu0 %v2908_v55 }
  0xdc   :  { %2669 = vmatpush3.bf16.msra.mxu0 %v2668_v61 }
  0xdd   :  { %2670 = vmatprep.subr.bf16.mxu0 %v2908_v55 }
  0xe0   :  { %2672 = vmatpush3.bf16.msra.mxu0 %v2671_v0 }
  0xe1   :  { %2673 = vmatprep.subr.bf16.mxu0 %v2908_v55 }
  0xe4   :  { %2675 = vmatpush3.bf16.msra.mxu0 %v2674_v3 }
  0xe5   :  { %2676 = vmatprep.subr.bf16.mxu0 %v2908_v55 }
  0xe8   :  { %2678 = vmatpush3.bf16.msra.mxu0 %v2677_v6 }
  0xe9   :  { %2679 = vmatprep.subr.bf16.mxu0 %v2908_v55 }
  0xec   :  { %2681 = vmatpush3.bf16.msra.mxu0 %v2680_v20 }
  0xed   :  { %2682 = vmatprep.subr.bf16.mxu0 %v2908_v55 }
  0xf0   :  { %2684 = vmatpush3.bf16.msra.mxu0 %v2683_v24 }
 0x106   :  { %v2354_v39 = vpop.f32.mrb[0].mxu0 }
 0x107   :  { %v2355_v41 = vpop.f32.mrb[1].mxu0 }
 0x108   :  { %v2356_v42 = vadd.f32 %v2355_v41, %v2354_v39  ;;  %v2357_v43 = vpop.f32.mrb[2].mxu0  ;;  %v2376_v44 = vpop.f32.mrb[0].mxu1 }
 0x109   :  { %v2358_v45 = vpop.f32.mrb[3].mxu0  ;;  %v2377_v47 = vpop.f32.mrb[1].mxu1 }
 0x10a   :  { %v1595_v46 = vadd.f32 %v2356_v42, %v2152_v40  ;;  %v2378_v48 = vadd.f32 %v2377_v47, %v2376_v44  ;;  %v2379_v49 = vpop.f32.mrb[2].mxu1 }
 0x10b   :  { %v2380_v50 = vpop.f32.mrb[3].mxu1 }
 0x10c   :  { %v1635_v51 = vadd.f32 %v2378_v48, %v1595_v46 }
 0x126   :  { %v2398_v7 = vpop.f32.mrb[4].mxu0 }
 0x127   :  { %v2399_v8 = vpop.f32.mrb[5].mxu0 }
 0x128   :  { %v2400_v9 = vadd.f32 %v2399_v8, %v2398_v7  ;;  %v2401_v10 = vpop.f32.mrb[6].mxu0  ;;  %v2420_v11 = vpop.f32.mrb[4].mxu1 }
 0x129   :  { %v2402_v12 = vpop.f32.mrb[7].mxu0  ;;  %v2421_v14 = vpop.f32.mrb[5].mxu1 }
 0x12a   :  { %v1675_v13 = vadd.f32 %v2400_v9, %v1635_v51  ;;  %v2422_v15 = vadd.f32 %v2421_v14, %v2420_v11  ;;  %v2423_v16 = vpop.f32.mrb[6].mxu1  ;;  %v2337_v9 = vld [vmem:[%s3096_s4] ss:$0 sm:$0xff] }
 0x12b   :  { %v2424_v19 = vpop.f32.mrb[7].mxu1 }
 0x12c   :  { %v1715_v21 = vadd.f32 %v2422_v15, %v1675_v13 }
 0x146   :  { %v2442_v25 = vpop.f32.mrb[8].mxu0 }
 0x147   :  { %v2443_v26 = vpop.f32.mrb[9].mxu0 }
 0x148   :  { %v2444_v27 = vadd.f32 %v2443_v26, %v2442_v25  ;;  %v2445_v28 = vpop.f32.mrb[10].mxu0  ;;  %v2464_v29 = vpop.f32.mrb[8].mxu1 }
 0x149   :  { %v2446_v30 = vpop.f32.mrb[11].mxu0  ;;  %v2465_v31 = vpop.f32.mrb[9].mxu1 }
 0x14a   :  { %v1755_v32 = vadd.f32 %v2444_v27, %v1715_v21  ;;  %v2466_v33 = vadd.f32 %v2465_v31, %v2464_v29  ;;  %v2467_v34 = vpop.f32.mrb[10].mxu1 }
 0x14b   :  { %v2468_v35 = vpop.f32.mrb[11].mxu1 }
 0x14c   :  { %v1795_v36 = vadd.f32 %v2466_v33, %v1755_v32 }
 0x166   :  { %v2486_v37 = vpop.f32.mrb[12].mxu0 }
 0x167   :  { %v2487_v38 = vpop.f32.mrb[13].mxu0 }
 0x168   :  { %v2488_v39 = vadd.f32 %v2487_v38, %v2486_v37  ;;  %v2489_v40 = vpop.f32.mrb[14].mxu0  ;;  %v2508_v41 = vpop.f32.mrb[12].mxu1 }
 0x169   :  { %v2490_v42 = vpop.f32.mrb[15].mxu0  ;;  %v2509_v44 = vpop.f32.mrb[13].mxu1 }
 0x16a   :  { %v1835_v43 = vadd.f32 %v2488_v39, %v1795_v36  ;;  %v2510_v45 = vadd.f32 %v2509_v44, %v2508_v41  ;;  %v2511_v46 = vpop.f32.mrb[14].mxu1 }
 0x16b   :  { %v2512_v47 = vpop.f32.mrb[15].mxu1 }
 0x16c   :  { %v1875_v48 = vadd.f32 %v2510_v45, %v1835_v43 }
 0x186   :  { %v2530_v49 = vpop.f32.mrb[16].mxu0 }
 0x187   :  { %v2531_v50 = vpop.f32.mrb[17].mxu0 }
 0x188   :  { %v2532_v51 = vadd.f32 %v2531_v50, %v2530_v49  ;;  %v2533_v52 = vpop.f32.mrb[18].mxu0  ;;  %v2552_v53 = vpop.f32.mrb[16].mxu1 }
 0x189   :  { %v2534_v54 = vpop.f32.mrb[19].mxu0  ;;  %v2553_v56 = vpop.f32.mrb[17].mxu1 }
 0x18a   :  { %v1915_v55 = vadd.f32 %v2532_v51, %v1875_v48  ;;  %v2554_v57 = vadd.f32 %v2553_v56, %v2552_v53  ;;  %v2555_v58 = vpop.f32.mrb[18].mxu1 }
 0x18b   :  { %v2556_v59 = vpop.f32.mrb[19].mxu1 }
 0x18c   :  { %v1955_v60 = vadd.f32 %v2554_v57, %v1915_v55 }
 0x1a6   :  { %v2574_v61 = vpop.f32.mrb[20].mxu0 }
 0x1a7   :  { %v2575_v62 = vpop.f32.mrb[21].mxu0 }
 0x1a8   :  { %v2576_v63 = vadd.f32 %v2575_v62, %v2574_v61  ;;  %v2577_v0 = vpop.f32.mrb[22].mxu0  ;;  %v2034_v1 = vpop.f32.mrb[20].mxu1 }
 0x1a9   :  { %v2578_v2 = vpop.f32.mrb[23].mxu0  ;;  %v2624_v3 = vpop.f32.mrb[21].mxu1 }
 0x1aa   :  { %v1995_v4 = vadd.f32 %v2576_v63, %v1955_v60  ;;  %v2037_v5 = vpop.f32.mrb[22].mxu1 }
 0x1ab   :  { %v2625_v6 = vpop.f32.mrb[23].mxu1 }
 0x1ac   :  { %v2035_v7 = vadd.f32 %v2034_v1, %v1995_v4 }
 0x1ae   :  { %v2040_v8 = vmax.f32 %v2035_v7, 0.0 }
 0x1b0   :  { %2659 = vmatmul.mubr.f32.vlgmr.msra.gmra.mrb[24].mxu0 %v2040_v8 }
 0x283   :  { %v2130_v10 = vpop.f32.mrb[24].mxu0 }
 0x284   :  { %v2131_v11 = vadd.f32 %v2337_v9, %v2130_v10  ;;  %v2660_v12 = vpop.f32.mrb[25].mxu0 }
 0x286   :  { %v2135_v13 = vsel %vm2134_vm1, %v2131_v11, -inf }
 0x287   :  { %2136 = vmax.xlane.f32.xlu0 %v2135_v13 }
 0x314   :  { %v2137_v14 = vpop.xlane.xlu0 %2136 }
 0x315   :  { %v2138_v15 = vsub.f32 %v2131_v11, %v2137_v14 }
 0x317   :  { %v2139_v16 = vmul.f32 1.442695, %v2138_v15 }
 0x319   :  { %2875 = vpow2.f32 %v2139_v16 }
 0x323   :  { %v2876_v17 = vpop.eup %2875 }
 0x324   :  { %v2141_v18 = vsel %vm2134_vm1, %v2876_v17, 0.0 }
 0x325   :  { %2142 = vadd.xlane.f32.xlu0 %v2141_v18 }
 0x3b2   :  { %v2143_v19 = vpop.xlane.xlu0 %2142 }
 0x3b3   :  { %2877 = vrcp.f32 %v2143_v19 }
 0x3bd   :  { %v2878_v20 = vpop.eup %2877 }
 0x3be   :  { %v2145_v21 = vmul.f32 %v2878_v20, %v2876_v17 }
 0x3c0   :  { %2146 = vst.msk [vmem:[%s3097_s5] sm:$0xff] %vm2134_vm1, %v2145_v21 }
 0x3c1   :  { %2151 = vsyncpa [#allocation3], 1 }

</bundles_post_ra>
